<compile_context>
chip_gen: v5e
topology: v5e:2x2
jax: 0.10.0
libtpu: 0.0.40
codegen_flags: <defaults>
</compile_context>

<pallas_src>
import functools

import jax
import jax.numpy as jnp
from jax.experimental import pallas as pl
from jax.experimental.pallas import tpu as pltpu


def _round_up(v, m):
    return (v + m - 1) // m * m


def _pick_divisor(n, candidates):
    for c in candidates:
        if n % c == 0:
            return c
    return n


# ---------------------------------------------------------------------------
# Kernel 1: deg^-1/2 from the int8 adjacency (self-loop added analytically).
#   deg_i = sum_j A[i, j] + 1 ;  out_i = rsqrt(deg_i)
# ---------------------------------------------------------------------------
def _deg_kernel(a_ref, o_ref, acc_ref):
    k = pl.program_id(1)

    @pl.when(k == 0)
    def _():
        acc_ref[...] = jnp.zeros_like(acc_ref)

    acc_ref[...] += jnp.sum(a_ref[...].astype(jnp.float32), axis=1, keepdims=True)

    @pl.when(k == pl.num_programs(1) - 1)
    def _():
        o_ref[...] = jax.lax.rsqrt(acc_ref[...] + 1.0)  # +1 self-loop; deg >= 1


def deg_inv_sqrt(a_i8, *, tm, tk):
    n = a_i8.shape[0]
    return pl.pallas_call(
        _deg_kernel,
        out_shape=jax.ShapeDtypeStruct((n, 1), jnp.float32),
        grid=(n // tm, n // tk),
        in_specs=[pl.BlockSpec((tm, tk), lambda i, k: (i, k))],
        out_specs=pl.BlockSpec((tm, 1), lambda i, k: (i, 0)),
        scratch_shapes=[pltpu.VMEM((tm, 1), jnp.float32)],
        compiler_params=pltpu.CompilerParams(
            dimension_semantics=("parallel", "arbitrary")),
    )(a_i8)


# ---------------------------------------------------------------------------
# Kernel 2 (first layer only): Y0 = s * (X @ W0), row-tiled, bf16 output.
# ---------------------------------------------------------------------------
def _xw_kernel(x_ref, w_ref, s_ref, o_ref):
    xw = jnp.dot(x_ref[...], w_ref[...], preferred_element_type=jnp.float32)
    o_ref[...] = (xw * s_ref[...]).astype(o_ref.dtype)


def xw_rowscale(x_bf16, w_bf16, s, *, tm):
    n, f_in = x_bf16.shape
    f_out = w_bf16.shape[1]
    return pl.pallas_call(
        _xw_kernel,
        out_shape=jax.ShapeDtypeStruct((n, f_out), jnp.bfloat16),
        grid=(n // tm,),
        in_specs=[
            pl.BlockSpec((tm, f_in), lambda i: (i, 0)),     # full feature dim
            pl.BlockSpec((f_in, f_out), lambda i: (0, 0)),  # resident bf16 W
            pl.BlockSpec((tm, 1), lambda i: (i, 0)),
        ],
        out_specs=pl.BlockSpec((tm, f_out), lambda i: (i, 0)),
        compiler_params=pltpu.CompilerParams(dimension_semantics=("parallel",)),
    )(x_bf16, w_bf16, s)


# ---------------------------------------------------------------------------
# Kernel 3 (hidden layers): tiled accumulated matmul
#   h      = ReLU( scale * [ s * (A @ Y + Y) ] + shift )        (bias+BN fused)
#   Y_next = s * (h @ W_next)                                    (fused next XW)
# Output is bf16 Y_next for the next layer.  A streams as int8.
# ---------------------------------------------------------------------------
def _prop_hidden_kernel(a_ref, yk_ref, yi_ref, s_ref, scale_ref, shift_ref,
                        wn_ref, o_ref, acc_ref):
    k = pl.program_id(1)

    @pl.when(k == 0)
    def _():
        acc_ref[...] = jnp.zeros_like(acc_ref)

    acc_ref[...] += jnp.dot(a_ref[...].astype(jnp.bfloat16), yk_ref[...],
                            preferred_element_type=jnp.float32)

    @pl.when(k == pl.num_programs(1) - 1)
    def _():
        h = (acc_ref[...] + yi_ref[...].astype(jnp.float32)) * s_ref[...]
        h = h * scale_ref[...] + shift_ref[...]
        h = jnp.maximum(h, 0.0)
        # TODO(synk): training-mode dropout would be applied to `h` here.
        y_next = jnp.dot(h.astype(jnp.bfloat16), wn_ref[...],
                         preferred_element_type=jnp.float32) * s_ref[...]
        o_ref[...] = y_next.astype(o_ref.dtype)


def propagate_hidden(a_i8, y, s, scale, shift, w_next, *, tm, tk):
    n = a_i8.shape[0]
    fp = y.shape[1]
    fn = w_next.shape[1]
    cost = pl.CostEstimate(
        flops=2 * n * n * fp + 2 * n * fp * fn,
        transcendentals=0,
        bytes_accessed=n * n + (n // tm) * n * fp * 2 + 2 * n * fp * 2
        + fp * fn * 2 + n * fn * 2,
    )
    return pl.pallas_call(
        _prop_hidden_kernel,
        out_shape=jax.ShapeDtypeStruct((n, fn), jnp.bfloat16),
        grid=(n // tm, n // tk),
        in_specs=[
            pl.BlockSpec((tm, tk), lambda i, k: (i, k)),   # A tile (int8 stream)
            pl.BlockSpec((tk, fp), lambda i, k: (k, 0)),   # Y, contraction side
            pl.BlockSpec((tm, fp), lambda i, k: (i, 0)),   # Y, self-loop rows
            pl.BlockSpec((tm, 1), lambda i, k: (i, 0)),    # deg^-1/2
            pl.BlockSpec((1, fp), lambda i, k: (0, 0)),    # fused BN scale
            pl.BlockSpec((1, fp), lambda i, k: (0, 0)),    # fused bias/BN shift
            pl.BlockSpec((fp, fn), lambda i, k: (0, 0)),   # next-layer W (bf16)
        ],
        out_specs=pl.BlockSpec((tm, fn), lambda i, k: (i, 0)),
        scratch_shapes=[pltpu.VMEM((tm, fp), jnp.float32)],
        compiler_params=pltpu.CompilerParams(
            dimension_semantics=("parallel", "arbitrary")),
        cost_estimate=cost,
    )(a_i8, y, y, s, scale, shift, w_next)


# ---------------------------------------------------------------------------
# Kernel 4 (last layer): propagation + bias + masked log_softmax (f32 output).
# ---------------------------------------------------------------------------
def _prop_final_kernel(a_ref, yk_ref, yi_ref, s_ref, shift_ref, o_ref,
                       acc_ref, *, nvalid):
    k = pl.program_id(1)

    @pl.when(k == 0)
    def _():
        acc_ref[...] = jnp.zeros_like(acc_ref)

    acc_ref[...] += jnp.dot(a_ref[...].astype(jnp.bfloat16), yk_ref[...],
                            preferred_element_type=jnp.float32)

    @pl.when(k == pl.num_programs(1) - 1)
    def _():
        z = (acc_ref[...] + yi_ref[...].astype(jnp.float32)) * s_ref[...]
        z = z + shift_ref[...]
        col = jax.lax.broadcasted_iota(jnp.int32, z.shape, 1)
        z = jnp.where(col < nvalid, z, jnp.float32(-1e30))  # mask padded classes
        m = jnp.max(z, axis=-1, keepdims=True)
        shifted = z - m
        lse = jnp.log(jnp.sum(jnp.exp(shifted), axis=-1, keepdims=True))
        o_ref[...] = shifted - lse


def propagate_final(a_i8, y, s, shift, *, nvalid, tm, tk):
    n = a_i8.shape[0]
    fp = y.shape[1]
    kernel = functools.partial(_prop_final_kernel, nvalid=nvalid)
    cost = pl.CostEstimate(
        flops=2 * n * n * fp,
        transcendentals=n * fp,
        bytes_accessed=n * n + (n // tm) * n * fp * 2 + n * fp * 2 + n * fp * 4,
    )
    return pl.pallas_call(
        kernel,
        out_shape=jax.ShapeDtypeStruct((n, fp), jnp.float32),
        grid=(n // tm, n // tk),
        in_specs=[
            pl.BlockSpec((tm, tk), lambda i, k: (i, k)),
            pl.BlockSpec((tk, fp), lambda i, k: (k, 0)),
            pl.BlockSpec((tm, fp), lambda i, k: (i, 0)),
            pl.BlockSpec((tm, 1), lambda i, k: (i, 0)),
            pl.BlockSpec((1, fp), lambda i, k: (0, 0)),
        ],
        out_specs=pl.BlockSpec((tm, fp), lambda i, k: (i, 0)),
        scratch_shapes=[pltpu.VMEM((tm, fp), jnp.float32)],
        compiler_params=pltpu.CompilerParams(
            dimension_semantics=("parallel", "arbitrary")),
        cost_estimate=cost,
    )(a_i8, y, y, s, shift)


# ---------------------------------------------------------------------------
# Parameters (GCNConv glorot weights, BatchNorm1d with non-trivial stats so the
# fused scale/shift path is actually exercised).
# ---------------------------------------------------------------------------
def init_gcn_params(key, nfeat, nhid, nclass, num_layers):
    dims = [nfeat] + [nhid] * (num_layers - 1) + [nclass]
    params = []
    for li in range(num_layers):
        f_in, f_out = dims[li], dims[li + 1]
        key, kw, kb, kg, kbe, km, kv = jax.random.split(key, 7)
        lim = jnp.sqrt(6.0 / (f_in + f_out))
        w = jax.random.uniform(kw, (f_in, f_out), jnp.float32, -lim, lim)
        b = 0.1 * jax.random.normal(kb, (f_out,), jnp.float32)
        if li < num_layers - 1:
            bn = {
                "gamma": 1.0 + 0.1 * jax.random.normal(kg, (f_out,), jnp.float32),
                "beta": 0.1 * jax.random.normal(kbe, (f_out,), jnp.float32),
                "mean": 0.1 * jax.random.normal(km, (f_out,), jnp.float32),
                "var": 1.0 + 0.5 * jax.random.uniform(kv, (f_out,), jnp.float32),
            }
        else:
            bn = None
        params.append({"w": w, "b": b, "bn": bn})
    return params


# ---------------------------------------------------------------------------
# Forward pass (eval mode, matches GCN_arxiv.forward).
# ---------------------------------------------------------------------------
def gcn_forward(params, x, adj_t, dropout_p=0.5):
    del dropout_p  # TODO(synk): eval mode only; dropout is identity.
    n, nfeat = x.shape
    nclass = params[-1]["w"].shape[1]
    num_layers = len(params)
    eps = 1e-5

    # Tile sizing: as large as sensible for HBM-roofline DMAs, but keep >= 2
    # row tiles so the "parallel" row axis can shard across v7x's two TCs.
    if n >= 4096:
        base = 512
    elif n >= 1024:
        base = 256
    else:
        base = 128
    npad = _round_up(n, base)
    tm = base if npad // base >= 2 else max(128, npad // 2)
    if npad % tm != 0:
        tm = base
    tk = _pick_divisor(npad, (512, 256, 128))
    tk_deg = _pick_divisor(npad, (2048, 1024, 512, 256, 128))

    # int8 adjacency (0/1 is exact) -> half the HBM bytes of a bf16 stream.
    a_i8 = jnp.zeros((npad, npad), jnp.int8).at[:n, :n].set(
        adj_t.astype(jnp.int8))

    # deg^-1/2 computed once, reused by every layer.
    s = deg_inv_sqrt(a_i8, tm=tm, tk=tk_deg)

    # First layer X @ W (feature dim left unpadded; full-dim block is legal).
    x_bf = jnp.zeros((npad, nfeat), jnp.bfloat16).at[:n, :].set(
        x.astype(jnp.bfloat16))
    w0 = params[0]["w"]
    f0 = w0.shape[1]
    f0p = _round_up(f0, 128)
    w0_bf = jnp.zeros((nfeat, f0p), jnp.bfloat16).at[:, :f0].set(
        w0.astype(jnp.bfloat16))
    y = xw_rowscale(x_bf, w0_bf, s, tm=tm)            # (npad, f0p) bf16

    # Hidden layers: prop + bias/BN + ReLU, fused with the next layer's X @ W.
    for li in range(num_layers - 1):
        p = params[li]
        f_out = p["w"].shape[1]
        fp = _round_up(f_out, 128)
        bn = p["bn"]
        bn_scale = bn["gamma"] / jnp.sqrt(bn["var"] + eps)
        scale = bn_scale
        shift = (p["b"] - bn["mean"]) * bn_scale + bn["beta"]
        scale_p = jnp.zeros((1, fp), jnp.float32).at[0, :f_out].set(scale)
        shift_p = jnp.zeros((1, fp), jnp.float32).at[0, :f_out].set(shift)

        w_next = params[li + 1]["w"]
        fn = w_next.shape[1]
        fnp = _round_up(fn, 128)
        wn_bf = jnp.zeros((fp, fnp), jnp.bfloat16).at[:f_out, :fn].set(
            w_next.astype(jnp.bfloat16))

        y = propagate_hidden(a_i8, y, s, scale_p, shift_p, wn_bf, tm=tm, tk=tk)

    # Last layer: prop + bias + masked log_softmax.
    p_last = params[-1]
    fl = p_last["w"].shape[1]
    flp = _round_up(fl, 128)
    shift_p = jnp.zeros((1, flp), jnp.float32).at[0, :fl].set(p_last["b"])
    out = propagate_final(a_i8, y, s, shift_p, nvalid=fl, tm=tm, tk=tk)
    return out[:n, :nclass]


# ---------------------------------------------------------------------------
# Pure-JAX f32 reference (dense normalized adjacency) for validation.
# ---------------------------------------------------------------------------
def gcn_reference(params, x, adj, eps=1e-5):
    n = x.shape[0]
    a_hat = adj + jnp.eye(n, dtype=adj.dtype)
    s = jax.lax.rsqrt(jnp.sum(a_hat, axis=1))
    a_norm = s[:, None] * a_hat * s[None, :]
    h = x
    for p in params:
        h = a_norm @ (h @ p["w"]) + p["b"]
        if p["bn"] is not None:
            bn = p["bn"]
            h = (h - bn["mean"]) / jnp.sqrt(bn["var"] + eps) * bn["gamma"] + bn["beta"]
            h = jnp.maximum(h, 0.0)
    return jax.nn.log_softmax(h, axis=-1)


if __name__ == "__main__":
    # Small, deterministic example shapes.
    N, NFEAT, NHID, NCLASS, NUM_LAYERS = 256, 32, 64, 16, 3

    key = jax.random.PRNGKey(0)
    kx, ka, kp = jax.random.split(key, 3)

    x = jax.random.normal(kx, (N, NFEAT), jnp.float32)
    # Random symmetric 0/1 adjacency (no self loops; normalization adds them).
    a_raw = (jax.random.uniform(ka, (N, N)) < 0.05).astype(jnp.float32)
    adj_t = jnp.maximum(a_raw, a_raw.T) * (1.0 - jnp.eye(N, dtype=jnp.float32))

    params = init_gcn_params(kp, NFEAT, NHID, NCLASS, NUM_LAYERS)

    out = gcn_forward(params, x, adj_t)
    out = jax.block_until_ready(out)

    assert out.shape == (N, NCLASS), out.shape
    assert bool(jnp.all(jnp.isfinite(out)))
    # log_softmax rows exponentiate-and-sum to ~1 (structural identity).
    assert bool(jnp.allclose(jnp.sum(jnp.exp(out), axis=-1), 1.0, atol=1e-3))
    # Compare against the f32 dense reference (bf16 activation / int8 A streams).
    ref = gcn_reference(params, x, adj_t)
    err = float(jnp.max(jnp.abs(out - ref)))
    assert err < 0.15, f"max |out - ref| = {err}"
    print("KERNEL_OK")
</pallas_src>

<mosaic_0001>
module attributes {stable_mosaic.version = 11 : i64} {
  func.func @_deg_kernel(%arg0: i32, %arg1: i32, %arg2: memref<128x256xi8, #tpu.memory_space<vmem>>, %arg3: memref<128x1xf32, #tpu.memory_space<vmem>>, %arg4: memref<128x1xf32, #tpu.memory_space<vmem>>) attributes {dimension_semantics = [#tpu.dimension_semantics<parallel>, #tpu.dimension_semantics<arbitrary>], iteration_bounds = array<i64: 2, 1>, scalar_prefetch = 0 : i64, scratch_operands = 1 : i64, tpu.core_type = #tpu.core_type<tc>, window_params = [{transform_indices = @transform_0, window_bounds = array<i64: 128, 256>}, {transform_indices = @transform_1, window_bounds = array<i64: 128, 1>}]} {
    %c0_i32 = arith.constant 0 : i32
    %0 = arith.cmpi eq, %arg1, %c0_i32 : i32
    %1 = arith.extui %0 : i1 to i32
    %c0_i32_0 = arith.constant 0 : i32
    %2 = arith.cmpi ne, %1, %c0_i32_0 : i32
    scf.if %2 {
      %cst_8 = arith.constant 0.000000e+00 : f32
      %13 = vector.broadcast %cst_8 : f32 to vector<128x1xf32>
      %c0_9 = arith.constant 0 : index
      %c0_10 = arith.constant 0 : index
      %14 = vector.load %arg4[%c0_9, %c0_10] : memref<128x1xf32, #tpu.memory_space<vmem>>, vector<128x1xf32>
      tpu.vector_store %arg4[%c0_9, %c0_10], %13 {strides = array<i32>} : memref<128x1xf32, #tpu.memory_space<vmem>>, vector<128x1xf32>,
    } else {
    }
    %c0 = arith.constant 0 : index
    %c0_1 = arith.constant 0 : index
    %3 = vector.load %arg4[%c0, %c0_1] : memref<128x1xf32, #tpu.memory_space<vmem>>, vector<128x1xf32>
    %c0_2 = arith.constant 0 : index
    %c0_3 = arith.constant 0 : index
    %4 = vector.load %arg2[%c0_2, %c0_3] : memref<128x256xi8, #tpu.memory_space<vmem>>, vector<128x256xi8>
    %5 = arith.sitofp %4 : vector<128x256xi8> to vector<128x256xf32>
    %cst = arith.constant dense<0.000000e+00> : vector<128xf32>
    %6 = vector.multi_reduction <add>, %5, %cst [1] : vector<128x256xf32> to vector<128xf32>
    %7 = vector.shape_cast %6 : vector<128xf32> to vector<128x1xf32>
    %8 = arith.addf %3, %7 : vector<128x1xf32>
    %c0_4 = arith.constant 0 : index
    %c0_5 = arith.constant 0 : index
    %9 = vector.load %arg4[%c0_4, %c0_5] : memref<128x1xf32, #tpu.memory_space<vmem>>, vector<128x1xf32>
    tpu.vector_store %arg4[%c0_4, %c0_5], %8 {strides = array<i32>} : memref<128x1xf32, #tpu.memory_space<vmem>>, vector<128x1xf32>,
    %c0_i32_6 = arith.constant 0 : i32
    %10 = arith.cmpi eq, %arg1, %c0_i32_6 : i32
    %11 = arith.extui %10 : i1 to i32
    %c0_i32_7 = arith.constant 0 : i32
    %12 = arith.cmpi ne, %11, %c0_i32_7 : i32
    scf.if %12 {
      %c0_8 = arith.constant 0 : index
      %c0_9 = arith.constant 0 : index
      %13 = vector.load %arg4[%c0_8, %c0_9] : memref<128x1xf32, #tpu.memory_space<vmem>>, vector<128x1xf32>
      %cst_10 = arith.constant 1.000000e+00 : f32
      %14 = vector.broadcast %cst_10 : f32 to vector<128x1xf32>
      %15 = arith.addf %13, %14 : vector<128x1xf32>
      %16 = math.rsqrt %15 : vector<128x1xf32>
      %c0_11 = arith.constant 0 : index
      %c0_12 = arith.constant 0 : index
      %17 = vector.load %arg3[%c0_11, %c0_12] : memref<128x1xf32, #tpu.memory_space<vmem>>, vector<128x1xf32>
      tpu.vector_store %arg3[%c0_11, %c0_12], %16 {strides = array<i32>} : memref<128x1xf32, #tpu.memory_space<vmem>>, vector<128x1xf32>,
    } else {
    }
    return
  }
  func.func @transform_0(%arg0: i32, %arg1: i32) -> (i32, i32) {
    %c0_i32 = arith.constant 0 : i32
    return %arg0, %arg1 : i32, i32
  }
  func.func @transform_1(%arg0: i32, %arg1: i32) -> (i32, i32) {
    %c0_i32 = arith.constant 0 : i32
    %c0_i32_0 = arith.constant 0 : i32
    return %arg0, %c0_i32 : i32, i32
  }
}

</mosaic_0001>

<bundles_post_ra>
// kernel: tpu_custom_call.1
= control target key start
LH: loop header
LB: loop body
LE: loop exit
PB: predicated region body
PF: predicated region fallthrough
CT: control target
= control target key end

     0   :  { %6 = vsyncpa [#allocation4], 0  ;;  %s1180_s0 = inlined_call_operand.hbm [shape: s8[256,256], index: 0, kind: input, shape index: {}]   ;;  %s1181_s1 = inlined_call_operand.vmem [shape: f32[256,1], index: 1, kind: output, shape index: {}]  }
   0x1   :  { %8 = vsyncpa [#allocation4 + $0x1], 0  ;;  %s840_s6 = smov 0   ;;  %s842_s7 = smov 0  }
   0x2   :  { %s844_s8 = smov 0   ;;  %s846_s9 = smov 0  }
   0x3   :  { %s848_s10 = smov 0   ;;  %s850_s11 = smov 0  }
   0x4 LB: > { %s639_s12 = sadd.s32 4294967295, %s825_s11   ;;  %s26_s13 = sadd.s32 1, %s821_s10  ;;  %s825_s11 = sphi %s850_s11, %s14_s11   ;;  %s821_s10 = sphi %s848_s10, %s1189_s10   ;;  %s817_s9 = sphi %s846_s9, %s1188_s9   ;;  %s813_s8 = sphi %s844_s8, %s1187_s8   ;;  %s809_s7 = sphi %s842_s7, %s1186_s7   ;;  %s805_s6 = sphi %s840_s6, %s1185_s6  }
   0x5   : > { %p28_p0 = scmp.ge.s32.totalorder %s26_s13, 2  ;;  %s35_s14 = sadd.s32 1, %s813_s8 }
   0x6   : > { %p42_p1 = scmp.ne.s32.totalorder %s813_s8, %s809_s7  ;;  %p43_p2 = scmp.eq.s32.totalorder %s825_s11, 0 }
   0x7   : > { %s1191_s13 = smov (%p28_p0, %s26_s13), 0  ;;  %p48_p4 = scmp.ne.s32.totalorder %s809_s7, %s805_s6 }
   0x8   : > { %p876_p3 = por %p43_p2, %p42_p1  ;;  %s30_s16 = ssub.s32 %s821_s10, %s1191_s13 }
   0x9   : > { %p49_p5 = scmp.eq.s32.totalorder %s639_s12, 0  ;;  %p33_p6 = scmp.eq.s32.totalorder %s30_s16, 0 }
   0xa   : > { %p661_p8 = scmp.lt.s32.totalorder %s825_s11, 2  ;;  %s98_s19 = sand.u32 1, %s813_s8  }
   0xb   : > { %p883_p7 = por %p49_p5, %p48_p4  ;;  %s654_s20 = sshll.u32 %s821_s10, 6 }
   0xc   : > { %s889_s18 = scalar_select %p33_p6, %s813_s8, %s35_s14  }
   0xd   : > { %s643_s21 = sshll.u32 %s98_s19, 6  ;;  %s110_s24 = scalar_lea.hbm %s1180_s0, %s654_s20 }
   0xe   : > { %s111_s25 = sshll.u32 %s110_s24, 4  ;;  %s102_s26 = scalar_lea.vmem [#allocation3], %s643_s21  ;;  %s112_s25 = int_to_ptr.hbm [resolvable:$true] %s111_s25 }
   0xf   : > { %s113_s27 = sshll.u32 %s102_s26, 4  ;;  %p658_p9 = pnand %p661_p8, %p876_p3  ;;  %s114_s27 = int_to_ptr.vmem [resolvable:$true] %s113_s27 }
  0x10   : > { %p647_p10 = scmp.ge.s32.totalorder %s825_s11, 1  ;;  %p121_p11 = scmp.lt.s32.totalorder %s825_s11, 3 }
  0x11   : > { %s99_s28 = scalar_lea.sflag [#allocation4], %s98_s19  ;;  %s827_s29 = smov 256  }
  0x12   : > { %s828_s30 = smov 16   ;;  %p122_p12 = pnand %p647_p10, %p121_p11 }
  0x13   : > { %660 = dma.hbm_to_vmem [thread:$0]  (!%p658_p9), %s112_s25, 1024, %s114_s27, %s99_s28, %s827_s29, %s827_s29, %s828_s30  }
  0x14   : > { %125 = sbr.rel (%p122_p12) target bundleno = 221 (0xdd), region = 24  ;;  %s127_s2 = sand.u32 (!%p122_p12), 1, %s809_s7  }
  0x15   : > { %s648_s3 = sshll.u32 (!%p122_p12), %s127_s2, 6  ;;  %s128_s4 = scalar_lea.sflag (!%p122_p12), [#allocation4], %s127_s2 }
  0x16   : > { %s901_s5 = scalar_lea.vmem (!%p122_p12), [#allocation3], %s648_s3 }
  0x19   : > { %800 = dma.done.wait (%p883_p7), %s128_s4, 1024  }
  0x1a   : > { %802 = vsyncadd (%p883_p7), %s128_s4, 4294966272  ;;  %v198_v0 = vld [vmem:[%s901_s5 + $0x10] sm:$0xff]  ;;  %v199_v1 = vld [vmem:[%s901_s5 + $0x18] sm:$0xff]  ;;  %vm163_vm0 = vcmask 7168   ;;  %v829_v57 = vmov 0.0   ;;  %s649_s6 = sshll.u32 %s817_s9, 4 }
  0x1b   : > { %v196_v2 = vld [vmem:[%s901_s5] sm:$0xff]  ;;  %v212_v3 = vunpack.c.0.s8 %v198_v0  ;;  %v213_v4 = vunpack.c.0.s8 %v199_v1  ;;  %v197_v5 = vld [vmem:[%s901_s5 + $0x8] sm:$0xff]  ;;  %v214_v10 = vunpack.c.1.s8 %v198_v0  ;;  %v215_v11 = vunpack.c.1.s8 %v199_v1  ;;  %168 = vst.msk [vmem:[#allocation2 + $0x20] sm:$0xff] %vm163_vm0, %v829_v57  ;;  %v202_v62 = vld [vmem:[%s901_s5 + $0x30] sm:$0xff]  ;;  %p947_p13 = scmp.lt.s32.totalorder %s649_s6, 31 }
  0x1c   : > { %v208_v6 = vunpack.c.2.s8 %v196_v2  ;;  %v204_v7 = vunpack.c.0.s8 %v196_v2  ;;  %v209_v8 = vunpack.c.2.s8 %v197_v5  ;;  %v205_v9 = vunpack.c.0.s8 %v197_v5  ;;  %v200_v27 = vld [vmem:[%s901_s5 + $0x20] sm:$0xff]  ;;  %v201_v28 = vld [vmem:[%s901_s5 + $0x28] sm:$0xff]  ;;  %164 = vst.msk [vmem:[#allocation2] sm:$0xff] %vm163_vm0, %v829_v57 }
  0x1d   : > { %v244_v12 = vcvt.s32.f32 %v212_v3  ;;  %v245_v13 = vcvt.s32.f32 %v213_v4  ;;  %v210_v19 = vunpack.c.3.s8 %v196_v2  ;;  %v211_v20 = vunpack.c.3.s8 %v197_v5  ;;  %165 = vst.msk [vmem:[#allocation2 + $0x8] sm:$0xff] %vm163_vm0, %v829_v57  ;;  %s1193_s6 = smov (!%p947_p13, %s649_s6), 31 }
  0x1e   : > { %v240_v14 = vcvt.s32.f32 %v208_v6  ;;  %v236_v15 = vcvt.s32.f32 %v204_v7  ;;  %v241_v16 = vcvt.s32.f32 %v209_v8  ;;  %v237_v17 = vcvt.s32.f32 %v205_v9  ;;  %166 = vst.msk [vmem:[#allocation2 + $0x10] sm:$0xff] %vm163_vm0, %v829_v57  ;;  %s650_s9 = sshll.u32 %s1193_s6, 3 }
  0x1f   : > { %v280_v18 = vadd.f32 %v245_v13, %v244_v12  ;;  %v206_v21 = vunpack.c.1.s8 %v196_v2  ;;  %v207_v24 = vunpack.c.1.s8 %v197_v5  ;;  %v246_v25 = vcvt.s32.f32 %v214_v10  ;;  %167 = vst.msk [vmem:[#allocation2 + $0x18] sm:$0xff] %vm163_vm0, %v829_v57  ;;  %s997_s16 = scalar_lea.vmem %s1181_s1, %s650_s9 }
  0x20   : > { %v274_v22 = vadd.f32 %v241_v16, %v240_v14  ;;  %v268_v23 = vadd.f32 %v237_v17, %v236_v15  ;;  %v247_v26 = vcvt.s32.f32 %v215_v11  ;;  %v242_v29 = vcvt.s32.f32 %v210_v19  ;;  %169 = vst.msk [vmem:[#allocation2 + $0x28] sm:$0xff] %vm163_vm0, %v829_v57 }
  0x21   : > { %281 = vadd.xlane.f32.xlu2 %v280_v18  ;;  %v243_v30 = vcvt.s32.f32 %v211_v20  ;;  %v238_v31 = vcvt.s32.f32 %v206_v21  ;;  %v239_v32 = vcvt.s32.f32 %v207_v24  ;;  %v220_v33 = vunpack.c.0.s8 %v200_v27  ;;  %170 = vst.msk [vmem:[#allocation2 + $0x30] sm:$0xff] %vm163_vm0, %v829_v57 }
  0x22   : > { %275 = vadd.xlane.f32.xlu1 %v274_v22  ;;  %269 = vadd.xlane.f32.xlu0 %v268_v23  ;;  %v221_v34 = vunpack.c.0.s8 %v201_v28  ;;  %v283_v35 = vadd.f32 %v247_v26, %v246_v25  ;;  %v218_v36 = vunpack.c.3.s8 %v198_v0  ;;  %v219_v37 = vunpack.c.3.s8 %v199_v1  ;;  %171 = vst.msk [vmem:[#allocation2 + $0x38] sm:$0xff] %vm163_vm0, %v829_v57  ;;  %v184_v25 = vld [vmem:[#allocation2 + $0x20] sm:$0xff] }
  0x23   : > { %v277_v38 = vadd.f32 %v243_v30, %v242_v29  ;;  %v271_v39 = vadd.f32 %v239_v32, %v238_v31  ;;  %v216_v40 = vunpack.c.2.s8 %v198_v0  ;;  %v217_v41 = vunpack.c.2.s8 %v199_v1  ;;  %v203_v1 = vld [vmem:[%s901_s5 + $0x38] sm:$0xff]  ;;  %172 = vst.msk [vmem:[#allocation2 + $0x40] sm:$0xff] %vm163_vm0, %v829_v57 }
  0x24   : > { %v252_v42 = vcvt.s32.f32 %v220_v33  ;;  %v253_v43 = vcvt.s32.f32 %v221_v34  ;;  %v250_v44 = vcvt.s32.f32 %v218_v36  ;;  %v251_v45 = vcvt.s32.f32 %v219_v37  ;;  %173 = vst.msk [vmem:[#allocation2 + $0x48] sm:$0xff] %vm163_vm0, %v829_v57  ;;  %v181_v36 = vld [vmem:[#allocation2 + $0x8] sm:$0xff] }
  0x25   : > { %v248_v46 = vcvt.s32.f32 %v216_v40  ;;  %v249_v47 = vcvt.s32.f32 %v217_v41  ;;  %v226_v49 = vunpack.c.3.s8 %v200_v27  ;;  %v227_v50 = vunpack.c.3.s8 %v201_v28  ;;  %174 = vst.msk [vmem:[#allocation2 + $0x50] sm:$0xff] %vm163_vm0, %v829_v57  ;;  %v182_v26 = vld [vmem:[#allocation2 + $0x10] sm:$0xff] }
  0x26   : > { %v292_v48 = vadd.f32 %v253_v43, %v252_v42  ;;  %v289_v51 = vadd.f32 %v251_v45, %v250_v44  ;;  %v224_v52 = vunpack.c.2.s8 %v200_v27  ;;  %v225_v53 = vunpack.c.2.s8 %v201_v28  ;;  %175 = vst.msk [vmem:[#allocation2 + $0x58] sm:$0xff] %vm163_vm0, %v829_v57 }
  0x27   : > { %v286_v54 = vadd.f32 %v249_v47, %v248_v46  ;;  %v222_v55 = vunpack.c.1.s8 %v200_v27  ;;  %v223_v56 = vunpack.c.1.s8 %v201_v28  ;;  %v258_v58 = vcvt.s32.f32 %v226_v49  ;;  %176 = vst.msk [vmem:[#allocation2 + $0x60] sm:$0xff] %vm163_vm0, %v829_v57  ;;  %v180_v27 = vld [vmem:[#allocation2] sm:$0xff]  ;;  %v185_v34 = vld [vmem:[#allocation2 + $0x28] sm:$0xff] }
  0x28   : > { %v259_v59 = vcvt.s32.f32 %v227_v50  ;;  %v256_v60 = vcvt.s32.f32 %v224_v52  ;;  %v257_v61 = vcvt.s32.f32 %v225_v53  ;;  %v232_v2 = vunpack.c.2.s8 %v202_v62  ;;  %177 = vst.msk [vmem:[#allocation2 + $0x68] sm:$0xff] %vm163_vm0, %v829_v57 }
  0x29   : > { %284 = vadd.xlane.f32.xlu2 %v283_v35  ;;  %v254_v63 = vcvt.s32.f32 %v222_v55  ;;  %v255_v0 = vcvt.s32.f32 %v223_v56  ;;  %v233_v5 = vunpack.c.2.s8 %v203_v1  ;;  %v230_v6 = vunpack.c.1.s8 %v202_v62  ;;  %178 = vst.msk [vmem:[#allocation2 + $0x70] sm:$0xff] %vm163_vm0, %v829_v57  ;;  %v183_v35 = vld [vmem:[#allocation2 + $0x18] sm:$0xff] }
  0x2a   : > { %278 = vadd.xlane.f32.xlu1 %v277_v38  ;;  %272 = vadd.xlane.f32.xlu0 %v271_v39  ;;  %v301_v3 = vadd.f32 %v259_v59, %v258_v58  ;;  %v298_v4 = vadd.f32 %v257_v61, %v256_v60  ;;  %v231_v8 = vunpack.c.1.s8 %v203_v1  ;;  %v228_v9 = vunpack.c.0.s8 %v202_v62  ;;  %179 = vst.msk [vmem:[#allocation2 + $0x78] sm:$0xff] %vm163_vm0, %v829_v57  ;;  %v188_v49 = vld [vmem:[#allocation2 + $0x40] sm:$0xff]  ;;  %v187_v50 = vld [vmem:[#allocation2 + $0x38] sm:$0xff] }
  0x2b   : > { %v295_v7 = vadd.f32 %v255_v0, %v254_v63  ;;  %v229_v10 = vunpack.c.0.s8 %v203_v1  ;;  %v264_v11 = vcvt.s32.f32 %v232_v2  ;;  %v265_v12 = vcvt.s32.f32 %v233_v5 }
  0x2c   : > { %v262_v13 = vcvt.s32.f32 %v230_v6  ;;  %v263_v14 = vcvt.s32.f32 %v231_v8  ;;  %v260_v15 = vcvt.s32.f32 %v228_v9  ;;  %v234_v20 = vunpack.c.3.s8 %v202_v62  ;;  %v190_v9 = vld [vmem:[#allocation2 + $0x50] sm:$0xff] }
  0x2d   : > { %v261_v16 = vcvt.s32.f32 %v229_v10  ;;  %v310_v17 = vadd.f32 %v265_v12, %v264_v11  ;;  %v235_v21 = vunpack.c.3.s8 %v203_v1  ;;  %v191_v6 = vld [vmem:[#allocation2 + $0x58] sm:$0xff]  ;;  %v189_v10 = vld [vmem:[#allocation2 + $0x48] sm:$0xff] }
  0x2e   : > { %v307_v18 = vadd.f32 %v263_v14, %v262_v13  ;;  %v266_v22 = vcvt.s32.f32 %v234_v20 }
  0x2f   : > { %v304_v19 = vadd.f32 %v261_v16, %v260_v15  ;;  %v267_v23 = vcvt.s32.f32 %v235_v21 }
  0x31   : > { %293 = vadd.xlane.f32.xlu2 %v292_v48  ;;  %v313_v24 = vadd.f32 %v267_v23, %v266_v22 }
  0x32   : > { %290 = vadd.xlane.f32.xlu1 %v289_v51  ;;  %287 = vadd.xlane.f32.xlu0 %v286_v54  ;;  %v186_v51 = vld [vmem:[#allocation2 + $0x30] sm:$0xff] }
  0x39   : > { %302 = vadd.xlane.f32.xlu2 %v301_v3 }
  0x3a   : > { %299 = vadd.xlane.f32.xlu1 %v298_v4  ;;  %296 = vadd.xlane.f32.xlu0 %v295_v7 }
  0x41   : > { %311 = vadd.xlane.f32.xlu2 %v310_v17 }
  0x42   : > { %308 = vadd.xlane.f32.xlu1 %v307_v18  ;;  %305 = vadd.xlane.f32.xlu0 %v304_v19 }
  0x4a   : > { %314 = vadd.xlane.f32.xlu0 %v313_v24 }
  0x94   : > { %v282_v28 = vpop.xlane.xlu2 %281 }
  0x95   : > { %v320_v29 = vadd.f32 %v282_v28, %v184_v25  ;;  %v276_v30 = vpop.xlane.xlu1 %275  ;;  %v270_v31 = vpop.xlane.xlu0 %269 }
  0x96   : > { %v318_v32 = vadd.f32 %v276_v30, %v182_v26  ;;  %v316_v33 = vadd.f32 %v270_v31, %v180_v27 }
  0x97   : > { %337 = vst.msk [vmem:[#allocation2 + $0x20] sm:$0xff] %vm163_vm0, %v320_v29 }
  0x98   : > { %335 = vst.msk [vmem:[#allocation2 + $0x10] sm:$0xff] %vm163_vm0, %v318_v32 }
  0x99   : > { %333 = vst.msk [vmem:[#allocation2] sm:$0xff] %vm163_vm0, %v316_v33 }
  0x9c   : > { %v285_v37 = vpop.xlane.xlu2 %284 }
  0x9d   : > { %v321_v38 = vadd.f32 %v285_v37, %v185_v34  ;;  %v279_v39 = vpop.xlane.xlu1 %278  ;;  %v273_v40 = vpop.xlane.xlu0 %272 }
  0x9e   : > { %v356_v41 = vld [vmem:[#allocation2 + $0x20] sm:$0xff]  ;;  %v319_v42 = vadd.f32 %v279_v39, %v183_v35  ;;  %v317_v43 = vadd.f32 %v273_v40, %v181_v36 }
  0x9f   : > { %v934_v44 = vadd.f32 1.0, %v356_v41  ;;  %v354_v45 = vld [vmem:[#allocation2 + $0x10] sm:$0xff]  ;;  %338 = vst.msk [vmem:[#allocation2 + $0x28] sm:$0xff] %vm163_vm0, %v321_v38 }
  0xa0   : > { %v937_v46 = vadd.f32 1.0, %v354_v45  ;;  %v352_v47 = vld [vmem:[#allocation2] sm:$0xff]  ;;  %336 = vst.msk [vmem:[#allocation2 + $0x18] sm:$0xff] %vm163_vm0, %v319_v42  ;;  %v194_v42 = vld [vmem:[#allocation2 + $0x70] sm:$0xff] }
  0xa1   : > { %713 = vrsqrt.f32 %v934_v44  ;;  %v941_v48 = vadd.f32 1.0, %v352_v47  ;;  %334 = vst.msk [vmem:[#allocation2 + $0x8] sm:$0xff] %vm163_vm0, %v317_v43  ;;  %vm430_vm1 = vweird.f32 %v934_v44  ;;  %v193_v47 = vld [vmem:[#allocation2 + $0x68] sm:$0xff] }
  0xa2   : > { %715 = vrsqrt.f32 %v937_v46  ;;  %vm410_vm3 = vweird.f32 %v937_v46 }
  0xa3   : > { %717 = vrsqrt.f32 %v941_v48  ;;  %vm390_vm7 = vweird.f32 %v941_v48 }
  0xa4   : > { %v294_v52 = vpop.xlane.xlu2 %293 }
  0xa5   : > { %v324_v53 = vadd.f32 %v294_v52, %v188_v49  ;;  %v291_v54 = vpop.xlane.xlu1 %290  ;;  %v288_v55 = vpop.xlane.xlu0 %287 }
  0xa6   : > { %v357_v56 = vld [vmem:[#allocation2 + $0x28] sm:$0xff]  ;;  %v323_v57 = vadd.f32 %v291_v54, %v187_v50  ;;  %v322_v58 = vadd.f32 %v288_v55, %v186_v51 }
  0xa7   : > { %v951_v59 = vpop.eup %713  ;;  %v953_v60 = vadd.f32 1.0, %v357_v56  ;;  %v355_v61 = vld [vmem:[#allocation2 + $0x18] sm:$0xff]  ;;  %341 = vst.msk [vmem:[#allocation2 + $0x40] sm:$0xff] %vm163_vm0, %v324_v53 }
  0xa8   : > { %v956_v62 = vpop.eup %715  ;;  %v425_v63 = vmul.f32 %v951_v59, %v934_v44  ;;  %v960_v0 = vadd.f32 1.0, %v355_v61  ;;  %v353_v1 = vld [vmem:[#allocation2 + $0x8] sm:$0xff]  ;;  %340 = vst.msk [vmem:[#allocation2 + $0x38] sm:$0xff] %vm163_vm0, %v323_v57  ;;  %vm431_vm2 = vweird.f32 %v951_v59 }
  0xa9   : > { %v963_v2 = vpop.eup %717  ;;  %v405_v3 = vmul.f32 %v956_v62, %v937_v46  ;;  %719 = vrsqrt.f32 %v953_v60  ;;  %339 = vst.msk [vmem:[#allocation2 + $0x30] sm:$0xff] %vm163_vm0, %v322_v58  ;;  %v978_v8 = vadd.f32 1.0, %v353_v1  ;;  %vm411_vm4 = vweird.f32 %v956_v62  ;;  %vm432_vm6 = vmor %vm430_vm1, %vm431_vm2 }
  0xaa   : > { %v426_v4 = vmul.f32 %v951_v59, %v425_v63  ;;  %v385_v5 = vmul.f32 %v963_v2, %v941_v48  ;;  %721 = vrsqrt.f32 %v960_v0  ;;  %vm391_vm5 = vweird.f32 %v963_v2  ;;  %vm412_vm8 = vmor %vm410_vm3, %vm411_vm4  ;;  %v192_v48 = vld [vmem:[#allocation2 + $0x60] sm:$0xff] }
  0xab   : > { %v406_v7 = vmul.f32 %v956_v62, %v405_v3  ;;  %723 = vrsqrt.f32 %v978_v8  ;;  %vm440_vm9 = vweird.f32 %v953_v60  ;;  %vm392_vm10 = vmor %vm390_vm7, %vm391_vm5  ;;  %vm420_vm11 = vweird.f32 %v960_v0 }
  0xac   : > { %v427_v11 = vmul.f32 0.5, %v426_v4  ;;  %v386_v12 = vmul.f32 %v963_v2, %v385_v5  ;;  %v303_v13 = vpop.xlane.xlu2 %302  ;;  %vm400_vm2 = vweird.f32 %v978_v8 }
  0xad   : > { %v407_v14 = vmul.f32 0.5, %v406_v7  ;;  %v327_v15 = vadd.f32 %v303_v13, %v191_v6  ;;  %v300_v16 = vpop.xlane.xlu1 %299  ;;  %v297_v17 = vpop.xlane.xlu0 %296 }
  0xae   : > { %v428_v18 = vsub.f32 1.5, %v427_v11  ;;  %v387_v19 = vmul.f32 0.5, %v386_v12  ;;  %v360_v20 = vld [vmem:[#allocation2 + $0x40] sm:$0xff]  ;;  %v326_v21 = vadd.f32 %v300_v16, %v190_v9  ;;  %v325_v22 = vadd.f32 %v297_v17, %v189_v10  ;;  %v195_v12 = vld [vmem:[#allocation2 + $0x78] sm:$0xff] }
  0xaf   : > { %v985_v23 = vpop.eup %719  ;;  %v408_v24 = vsub.f32 1.5, %v407_v14  ;;  %v989_v25 = vadd.f32 1.0, %v360_v20  ;;  %344 = vst.msk [vmem:[#allocation2 + $0x58] sm:$0xff] %vm163_vm0, %v327_v15  ;;  %v359_v30 = vld [vmem:[#allocation2 + $0x38] sm:$0xff] }
  0xb0   : > { %v992_v26 = vpop.eup %721  ;;  %v429_v27 = vmul.f32 %v951_v59, %v428_v18  ;;  %v388_v28 = vsub.f32 1.5, %v387_v19  ;;  %v435_v29 = vmul.f32 %v985_v23, %v953_v60  ;;  %v358_v31 = vld [vmem:[#allocation2 + $0x30] sm:$0xff]  ;;  %343 = vst.msk [vmem:[#allocation2 + $0x50] sm:$0xff] %vm163_vm0, %v326_v21  ;;  %v1030_v40 = vadd.f32 1.0, %v359_v30 }
  0xb1   : > { %v409_v32 = vmul.f32 %v956_v62, %v408_v24  ;;  %v415_v33 = vmul.f32 %v992_v26, %v960_v0  ;;  %725 = vrsqrt.f32 %v989_v25  ;;  %342 = vst.msk [vmem:[#allocation2 + $0x48] sm:$0xff] %vm163_vm0, %v325_v22  ;;  %v1022_v37 = vpop.eup %723  ;;  %v1032_v41 = vadd.f32 1.0, %v358_v31 }
  0xb2   : > { %v433_v34 = vsel %vm432_vm6, %v951_v59, %v429_v27  ;;  %v389_v35 = vmul.f32 %v963_v2, %v388_v28  ;;  %v436_v36 = vmul.f32 %v985_v23, %v435_v29  ;;  %v395_v45 = vmul.f32 %v1022_v37, %v978_v8 }
  0xb3   : > { %548 = vst.msk [vmem:[%s997_s16 + $0x20] sm:$0xff] %vm163_vm0, %v433_v34  ;;  %v413_v38 = vsel %vm412_vm8, %v956_v62, %v409_v32  ;;  %v416_v39 = vmul.f32 %v992_v26, %v415_v33  ;;  %vm441_vm12 = vweird.f32 %v985_v23  ;;  %vm421_vm13 = vweird.f32 %v992_v26 }
  0xb4   : > { %546 = vst.msk [vmem:[%s997_s16 + $0x10] sm:$0xff] %vm163_vm0, %v413_v38  ;;  %v393_v43 = vsel %vm392_vm10, %v963_v2, %v389_v35  ;;  %v437_v44 = vmul.f32 0.5, %v436_v36  ;;  %v312_v46 = vpop.xlane.xlu2 %311  ;;  %727 = vrsqrt.f32 %v1030_v40  ;;  %v396_v53 = vmul.f32 %v1022_v37, %v395_v45  ;;  %vm442_vm14 = vmor %vm440_vm9, %vm441_vm12 }
  0xb5   : > { %544 = vst.msk [vmem:[%s997_s16] sm:$0xff] %vm163_vm0, %v393_v43  ;;  %v417_v49 = vmul.f32 0.5, %v416_v39  ;;  %v309_v50 = vpop.xlane.xlu1 %308  ;;  %v306_v51 = vpop.xlane.xlu0 %305  ;;  %729 = vrsqrt.f32 %v1032_v41  ;;  %v330_v55 = vadd.f32 %v312_v46, %v194_v42  ;;  %vm401_vm15 = vweird.f32 %v1022_v37  ;;  %vm422_vm1 = vmor %vm420_vm11, %vm421_vm13 }
  0xb6   : > { %v438_v52 = vsub.f32 1.5, %v437_v44  ;;  %v363_v54 = vld [vmem:[#allocation2 + $0x58] sm:$0xff]  ;;  %v329_v61 = vadd.f32 %v309_v50, %v193_v47  ;;  %v328_v62 = vadd.f32 %v306_v51, %v192_v48  ;;  %v397_v1 = vmul.f32 0.5, %v396_v53  ;;  %vm402_vm3 = vmor %vm400_vm2, %vm401_vm15 }
  0xb7   : > { %v1047_v56 = vpop.eup %725  ;;  %v418_v57 = vsub.f32 1.5, %v417_v49  ;;  %v1049_v58 = vadd.f32 1.0, %v363_v54  ;;  %v362_v59 = vld [vmem:[#allocation2 + $0x50] sm:$0xff]  ;;  %347 = vst.msk [vmem:[#allocation2 + $0x70] sm:$0xff] %vm163_vm0, %v330_v55  ;;  %vm470_vm4 = vweird.f32 %v989_v25  ;;  %vm460_vm6 = vweird.f32 %v1030_v40 }
  0xb8   : > { %v439_v63 = vmul.f32 %v985_v23, %v438_v52  ;;  %v465_v2 = vmul.f32 %v1047_v56, %v989_v25  ;;  %v361_v3 = vld [vmem:[#allocation2 + $0x48] sm:$0xff]  ;;  %v1062_v5 = vadd.f32 1.0, %v362_v59  ;;  %346 = vst.msk [vmem:[#allocation2 + $0x68] sm:$0xff] %vm163_vm0, %v329_v61  ;;  %v398_v60 = vsub.f32 1.5, %v397_v1 }
  0xb9   : > { %v419_v4 = vmul.f32 %v992_v26, %v418_v57  ;;  %731 = vrsqrt.f32 %v1049_v58  ;;  %v1071_v9 = vadd.f32 1.0, %v361_v3  ;;  %345 = vst.msk [vmem:[#allocation2 + $0x60] sm:$0xff] %vm163_vm0, %v328_v62  ;;  %vm471_vm5 = vweird.f32 %v1047_v56 }
  0xba   : > { %v443_v6 = vsel %vm442_vm14, %v985_v23, %v439_v63  ;;  %v466_v7 = vmul.f32 %v1047_v56, %v465_v2  ;;  %v1074_v10 = vpop.eup %727  ;;  %733 = vrsqrt.f32 %v1062_v5  ;;  %v399_v0 = vmul.f32 %v1022_v37, %v398_v60  ;;  %vm472_vm7 = vmor %vm470_vm4, %vm471_vm5 }
  0xbb   : > { %549 = vst.msk [vmem:[%s997_s16 + $0x28] sm:$0xff] %vm163_vm0, %v443_v6  ;;  %v423_v11 = vsel %vm422_vm1, %v992_v26, %v419_v4  ;;  %v1080_v13 = vpop.eup %729  ;;  %v455_v15 = vmul.f32 %v1074_v10, %v1030_v40  ;;  %735 = vrsqrt.f32 %v1071_v9  ;;  %vm461_vm8 = vweird.f32 %v1074_v10 }
  0xbc   : > { %547 = vst.msk [vmem:[%s997_s16 + $0x18] sm:$0xff] %vm163_vm0, %v423_v11  ;;  %v467_v14 = vmul.f32 0.5, %v466_v7  ;;  %v445_v16 = vmul.f32 %v1080_v13, %v1032_v41  ;;  %v403_v18 = vsel %vm402_vm3, %v1022_v37, %v399_v0  ;;  %vm450_vm9 = vweird.f32 %v1032_v41  ;;  %vm462_vm11 = vmor %vm460_vm6, %vm461_vm8 }
  0xbd   : > { %v315_v17 = vpop.xlane.xlu0 %314  ;;  %v456_v19 = vmul.f32 %v1074_v10, %v455_v15  ;;  %545 = vst.msk [vmem:[%s997_s16 + $0x8] sm:$0xff] %vm163_vm0, %v403_v18  ;;  %vm451_vm10 = vweird.f32 %v1080_v13  ;;  %vm500_vm12 = vweird.f32 %v1049_v58  ;;  %vm490_vm15 = vweird.f32 %v1062_v5 }
  0xbe   : > { %v468_v8 = vsub.f32 1.5, %v467_v14  ;;  %v331_v20 = vadd.f32 %v315_v17, %v195_v12  ;;  %v446_v22 = vmul.f32 %v1080_v13, %v445_v16  ;;  %v366_v23 = vld [vmem:[#allocation2 + $0x70] sm:$0xff]  ;;  %vm452_vm14 = vmor %vm450_vm9, %vm451_vm10  ;;  %vm480_vm5 = vweird.f32 %v1071_v9 }
  0xbf   : > { %v732_v21 = vpop.eup %731  ;;  %v457_v26 = vmul.f32 0.5, %v456_v19  ;;  %v365_v28 = vld [vmem:[#allocation2 + $0x68] sm:$0xff]  ;;  %v1109_v31 = vadd.f32 1.0, %v366_v23 }
  0xc0   : > { %v469_v24 = vmul.f32 %v1047_v56, %v468_v8  ;;  %v495_v27 = vmul.f32 %v732_v21, %v1049_v58  ;;  %348 = vst.msk [vmem:[#allocation2 + $0x78] sm:$0xff] %vm163_vm0, %v331_v20  ;;  %v734_v29 = vpop.eup %733  ;;  %v447_v30 = vmul.f32 0.5, %v446_v22  ;;  %v1111_v32 = vadd.f32 1.0, %v365_v28  ;;  %v364_v44 = vld [vmem:[#allocation2 + $0x60] sm:$0xff] }
  0xc1   : > { %v458_v34 = vsub.f32 1.5, %v457_v26  ;;  %v485_v36 = vmul.f32 %v734_v29, %v1062_v5  ;;  %v736_v37 = vpop.eup %735  ;;  %737 = vrsqrt.f32 %v1109_v31  ;;  %vm501_vm13 = vweird.f32 %v732_v21 }
  0xc2   : > { %v473_v33 = vsel %vm472_vm7, %v1047_v56, %v469_v24  ;;  %v496_v35 = vmul.f32 %v732_v21, %v495_v27  ;;  %v448_v38 = vsub.f32 1.5, %v447_v30  ;;  %v475_v43 = vmul.f32 %v736_v37, %v1071_v9  ;;  %vm502_vm2 = vmor %vm500_vm12, %vm501_vm13 }
  0xc3   : > { %552 = vst.msk [vmem:[%s997_s16 + $0x40] sm:$0xff] %vm163_vm0, %v473_v33  ;;  %v459_v25 = vmul.f32 %v1074_v10, %v458_v34  ;;  %v486_v42 = vmul.f32 %v734_v29, %v485_v36  ;;  %739 = vrsqrt.f32 %v1111_v32  ;;  %vm491_vm1 = vweird.f32 %v734_v29 }
  0xc4   : > { %v497_v39 = vmul.f32 0.5, %v496_v35  ;;  %v449_v41 = vmul.f32 %v1080_v13, %v448_v38  ;;  %v476_v48 = vmul.f32 %v736_v37, %v475_v43  ;;  %v380_v40 = vadd.f32 1.0, %v364_v44  ;;  %vm492_vm4 = vmor %vm490_vm15, %vm491_vm1 }
  0xc5   : > { %v463_v45 = vsel %vm462_vm11, %v1074_v10, %v459_v25  ;;  %v487_v47 = vmul.f32 0.5, %v486_v42  ;;  %vm481_vm3 = vweird.f32 %v736_v37  ;;  %vm530_vm7 = vweird.f32 %v1109_v31 }
  0xc6   : > { %v498_v46 = vsub.f32 1.5, %v497_v39  ;;  %551 = vst.msk [vmem:[%s997_s16 + $0x38] sm:$0xff] %vm163_vm0, %v463_v45  ;;  %v453_v49 = vsel %vm452_vm14, %v1080_v13, %v449_v41  ;;  %v477_v53 = vmul.f32 0.5, %v476_v48  ;;  %741 = vrsqrt.f32 %v380_v40  ;;  %vm482_vm6 = vmor %vm480_vm5, %vm481_vm3 }
  0xc7   : > { %v367_v50 = vld [vmem:[#allocation2 + $0x78] sm:$0xff]  ;;  %550 = vst.msk [vmem:[%s997_s16 + $0x30] sm:$0xff] %vm163_vm0, %v453_v49  ;;  %v488_v52 = vsub.f32 1.5, %v487_v47  ;;  %v738_v55 = vpop.eup %737  ;;  %vm520_vm9 = vweird.f32 %v1111_v32  ;;  %vm510_vm14 = vweird.f32 %v380_v40 }
  0xc8   : > { %v499_v51 = vmul.f32 %v732_v21, %v498_v46  ;;  %v383_v54 = vadd.f32 1.0, %v367_v50  ;;  %v478_v59 = vsub.f32 1.5, %v477_v53  ;;  %v525_v61 = vmul.f32 %v738_v55, %v1109_v31 }
  0xc9   : > { %v489_v57 = vmul.f32 %v734_v29, %v488_v52  ;;  %v740_v62 = vpop.eup %739  ;;  %vm531_vm8 = vweird.f32 %v738_v55 }
  0xca   : > { %v503_v56 = vsel %vm502_vm2, %v732_v21, %v499_v51  ;;  %743 = vrsqrt.f32 %v383_v54  ;;  %v479_v63 = vmul.f32 %v736_v37, %v478_v59  ;;  %v526_v1 = vmul.f32 %v738_v55, %v525_v61  ;;  %vm532_vm11 = vmor %vm530_vm7, %vm531_vm8 }
  0xcb   : > { %555 = vst.msk [vmem:[%s997_s16 + $0x58] sm:$0xff] %vm163_vm0, %v503_v56  ;;  %v493_v58 = vsel %vm492_vm4, %v734_v29, %v489_v57  ;;  %v515_v2 = vmul.f32 %v740_v62, %v1111_v32  ;;  %vm521_vm10 = vweird.f32 %v740_v62  ;;  %vm540_vm2 = vweird.f32 %v383_v54 }
  0xcc   : > { %554 = vst.msk [vmem:[%s997_s16 + $0x50] sm:$0xff] %vm163_vm0, %v493_v58  ;;  %v483_v3 = vsel %vm482_vm6, %v736_v37, %v479_v63  ;;  %v527_v4 = vmul.f32 0.5, %v526_v1  ;;  %v742_v60 = vpop.eup %741  ;;  %vm522_vm12 = vmor %vm520_vm9, %vm521_vm10 }
  0xcd   : > { %v516_v6 = vmul.f32 %v740_v62, %v515_v2  ;;  %553 = vst.msk [vmem:[%s997_s16 + $0x48] sm:$0xff] %vm163_vm0, %v483_v3  ;;  %v505_v9 = vmul.f32 %v742_v60, %v380_v40  ;;  %vm511_vm13 = vweird.f32 %v742_v60 }
  0xce   : > { %v528_v5 = vsub.f32 1.5, %v527_v4  ;;  %vm512_vm1 = vmor %vm510_vm14, %vm511_vm13 }
  0xcf   : > { %v517_v7 = vmul.f32 0.5, %v516_v6  ;;  %v506_v13 = vmul.f32 %v742_v60, %v505_v9 }
  0xd0   : > { %v744_v10 = vpop.eup %743  ;;  %v529_v11 = vmul.f32 %v738_v55, %v528_v5 }
  0xd1   : > { %v518_v12 = vsub.f32 1.5, %v517_v7  ;;  %v535_v0 = vmul.f32 %v744_v10, %v383_v54  ;;  %v507_v16 = vmul.f32 0.5, %v506_v13  ;;  %vm541_vm15 = vweird.f32 %v744_v10 }
  0xd2   : > { %v533_v14 = vsel %vm532_vm11, %v738_v55, %v529_v11  ;;  %vm542_vm3 = vmor %vm540_vm2, %vm541_vm15 }
  0xd3   : > { %v519_v15 = vmul.f32 %v740_v62, %v518_v12  ;;  %v536_v17 = vmul.f32 %v744_v10, %v535_v0  ;;  %558 = vst.msk [vmem:[%s997_s16 + $0x70] sm:$0xff] %vm163_vm0, %v533_v14  ;;  %v508_v8 = vsub.f32 1.5, %v507_v16 }
  0xd5   : > { %v523_v18 = vsel %vm522_vm12, %v740_v62, %v519_v15  ;;  %v537_v19 = vmul.f32 0.5, %v536_v17  ;;  %v509_v20 = vmul.f32 %v742_v60, %v508_v8 }
  0xd6   : > { %557 = vst.msk [vmem:[%s997_s16 + $0x68] sm:$0xff] %vm163_vm0, %v523_v18 }
  0xd7   : > { %v538_v21 = vsub.f32 1.5, %v537_v19  ;;  %v513_v22 = vsel %vm512_vm1, %v742_v60, %v509_v20 }
  0xd8   : > { %556 = vst.msk [vmem:[%s997_s16 + $0x60] sm:$0xff] %vm163_vm0, %v513_v22 }
  0xd9   : > { %v539_v23 = vmul.f32 %v744_v10, %v538_v21 }
  0xdb   : > { %v543_v24 = vsel %vm542_vm3, %v744_v10, %v539_v23 }
  0xdc   : > { %559 = vst.msk [vmem:[%s997_s16 + $0x78] sm:$0xff] %vm163_vm0, %v543_v24 }
  0xdd PF: > { %s14_s11 = sadd.s32 1, %s825_s11   ;;  %s1185_s6 = smov %s809_s7 }
  0xde   : > { %p11_p0 = scmp.ge.s32.totalorder %s14_s11, 4   ;;  %s1186_s7 = smov %s813_s8 }
  0xdf   : > { %s1187_s8 = smov %s889_s18  ;;  %s1188_s9 = smov %s821_s10 }
  0xe0   : > { %s1189_s10 = smov %s1191_s13  ;;  %13 = sbr.rel (!%p11_p0) target bundleno = 4 (0x4), region = 72 }
  0xe5   :  { %582 = vsyncpa [#allocation4], 1 }
  0xe6   :  { %584 = vsyncpa [#allocation4 + $0x1], 1 }

</bundles_post_ra>
